<compile_context>
chip_gen: v7x
topology: tpu7x:2x2x1
jax: 0.10.0
libtpu: 0.0.40
codegen_flags: <defaults>
</compile_context>

<pallas_src>
import functools

import jax
import jax.numpy as jnp
from jax.experimental import pallas as pl
from jax.experimental.pallas import tpu as pltpu


def _layernorm(h):
    # torch.nn.LayerNorm((F,), elementwise_affine=False), eps=1e-5, biased variance
    # over the feature (last) dim, per node.
    m = jnp.mean(h, axis=-1, keepdims=True)
    d = h - m
    v = jnp.mean(d * d, axis=-1, keepdims=True)
    return d * jax.lax.rsqrt(v + 1e-5)


def encoder_kernel(x_ref, a_ref, wA_ref, wB_ref, rows_ref, out_ref, *, c_in, c_out):
    f32 = jnp.float32
    bf16 = jnp.bfloat16
    c2 = 2 * c_out

    A = a_ref[...]                       # (N, N) bf16
    x = x_ref[...].astype(bf16)          # (N, C_in)

    # ---------------- unpack packed parameters (static slices) ----------------
    # wA = [sig_w | c1_w1 | c1_w2], leading dim C_in
    sig_w = wA_ref[:, 0:c2]              # (C_in, C2)
    c1_w1 = wA_ref[:, c2:2 * c2]
    c1_w2 = wA_ref[:, 2 * c2:3 * c2]

    # wB = [fc1_wt | fc2_wt | fc3_wt | fc4_wt | mu_w1 | mu_w2 | lv_w1 | lv_w2], leading dim C2
    fc_w_width = 2 * c2 + 2 * c_out
    o = 0
    fc_w = wB_ref[:, o:o + fc_w_width]; o += fc_w_width          # (C2, 2C2+2C)
    mu_w1 = wB_ref[:, o:o + c_out]; o += c_out
    mu_w2 = wB_ref[:, o:o + c_out]; o += c_out
    lv_w1 = wB_ref[:, o:o + c_out]; o += c_out
    lv_w2 = wB_ref[:, o:o + c_out]; o += c_out

    # rows = [sig_b | fc1_b | fc2_b | fc3_b | fc4_b | c1_b | c1_g | mu_b | mu_g | lv_b | lv_g]
    r = rows_ref[...]                    # (1, 5*C2 + 6*C)
    o = 0
    sig_b = r[:, o:o + c2]; o += c2
    fc_b = r[:, o:o + fc_w_width]; o += fc_w_width
    c1_b = r[:, o:o + c2]; o += c2
    c1_g = r[:, o:o + c2]; o += c2
    mu_b = r[:, o:o + c_out]; o += c_out
    mu_g = r[:, o:o + c_out]; o += c_out
    lv_b = r[:, o:o + c_out]; o += c_out
    lv_g = r[:, o:o + c_out]; o += c_out

    # ---------------- fused first propagation: [signature conv | conv1] ----------------
    # conv1 gate blend folded into the weight: x @ (g*W1 + (1-g)*W2).
    gate1 = jax.nn.sigmoid(c1_g)                                   # (1, C2)
    w_c1 = gate1 * c1_w1 + (1.0 - gate1) * c1_w2                   # (C_in, C2)
    wx = jnp.concatenate([sig_w, w_c1], axis=1).astype(bf16)       # (C_in, 2*C2)

    hx = jnp.dot(x, wx, preferred_element_type=f32)                # (N, 2*C2)
    hp = jnp.dot(A, hx.astype(bf16), preferred_element_type=f32)   # (N, 2*C2)

    # ---------------- GraphSignature (use_gcn_sig=True) ----------------
    h_sig = jnp.maximum(hp[:, 0:c2] + sig_b, 0.0)                  # relu(A@(x@Wsig)+b)
    s = jnp.sum(h_sig, axis=0, keepdims=True)                      # x.sum(0) -> (1, C2)
    # fc1..fc4 fused into one small f32 matmul (wrapper passes W.T already).
    fc_out = jnp.tanh(jnp.dot(s, fc_w, preferred_element_type=f32) + fc_b)
    g1 = fc_out[:, 0:c2]
    b1 = fc_out[:, c2:2 * c2]
    g2 = fc_out[:, 2 * c2:2 * c2 + c_out]
    b2 = fc_out[:, 2 * c2 + c_out:2 * c2 + 2 * c_out]

    # ---------------- encoder.conv1: bias + FiLM + relu + LayerNorm ----------------
    h1 = g1 * (hp[:, c2:2 * c2] + c1_b) + b1
    h1 = jnp.maximum(h1, 0.0)
    h1 = _layernorm(h1)                                            # (N, C2)

    # ---------------- fused VGAE heads: [mu | logvar] in one propagation ----------------
    gate_mu = jax.nn.sigmoid(mu_g)
    gate_lv = jax.nn.sigmoid(lv_g)
    w_mu = gate_mu * mu_w1 + (1.0 - gate_mu) * mu_w2               # (C2, C)
    w_lv = gate_lv * lv_w1 + (1.0 - gate_lv) * lv_w2               # (C2, C)
    w_head = jnp.concatenate([w_mu, w_lv], axis=1).astype(bf16)    # (C2, 2C)
    b_head = jnp.concatenate([mu_b, lv_b], axis=1)                 # (1, 2C)
    gamma_head = jnp.concatenate([g2, g2], axis=1)                 # shared FiLM for both heads
    beta_head = jnp.concatenate([b2, b2], axis=1)

    hh = jnp.dot(h1.astype(bf16), w_head, preferred_element_type=f32)   # (N, 2C)
    hh = jnp.dot(A, hh.astype(bf16), preferred_element_type=f32) + b_head
    hh = gamma_head * hh + beta_head

    mu = _layernorm(hh[:, 0:c_out])
    lv = _layernorm(hh[:, c_out:2 * c_out])
    out_ref[...] = jnp.concatenate([mu, lv], axis=1)               # lane-packed [mu | logvar]


def meta_gated_signature_encoder(x, a_hat, params):
    """Wrapper: packs params into 3 slabs, single pallas_call, whole graph resident in VMEM."""
    n, c_in = x.shape
    c_out = params['mu_b'].shape[-1]
    c2 = 2 * c_out

    # Packed operands (cuts DMA count from ~24 tiny tiles to 5 operands).
    wA = jnp.concatenate([params['sig_w'], params['c1_w1'], params['c1_w2']], axis=1)
    wB = jnp.concatenate([params['fc1_wt'], params['fc2_wt'],
                          params['fc3_wt'], params['fc4_wt'],
                          params['mu_w1'], params['mu_w2'],
                          params['lv_w1'], params['lv_w2']], axis=1)
    rows = jnp.concatenate([params['sig_b'],
                            params['fc1_b'], params['fc2_b'],
                            params['fc3_b'], params['fc4_b'],
                            params['c1_b'], params['c1_g'],
                            params['mu_b'], params['mu_g'],
                            params['lv_b'], params['lv_g']], axis=1)
    a_bf = a_hat.astype(jnp.bfloat16)   # adjacency in bf16: halves its footprint; f32 acc in-kernel

    operands = (x, a_bf, wA, wB, rows)
    vmem = lambda: pl.BlockSpec(memory_space=pltpu.MemorySpace.VMEM)

    bytes_accessed = sum(int(o.size) * o.dtype.itemsize for o in operands) + n * c2 * 4
    flops = (2 * n * n * (2 * c2 + 2 * c_out)          # the two A_hat propagations (dominant)
             + 2 * n * c_in * (2 * c2)                 # fused x @ [Wsig | Wc1]
             + 2 * n * c2 * (2 * c_out)                # fused h1 @ [Wmu | Wlv]
             + 2 * c2 * (2 * c2 + 2 * c_out))          # signature fc1..fc4
    transcendentals = 3 * n + 4 * (c2 + c_out)         # layernorm rsqrt + tanh/sigmoid rows
    cost = pl.CostEstimate(flops=int(flops),
                           transcendentals=int(transcendentals),
                           bytes_accessed=int(bytes_accessed))

    # Scoped-VMEM limit sized to the resident working set (matters on v5e's 16 MiB default).
    vmem_limit = int(max(16 << 20, min(4 * bytes_accessed + (8 << 20), 64 << 20)))

    packed = pl.pallas_call(
        functools.partial(encoder_kernel, c_in=c_in, c_out=c_out),
        out_shape=jax.ShapeDtypeStruct((n, c2), jnp.float32),
        in_specs=[vmem() for _ in operands],
        out_specs=vmem(),
        compiler_params=pltpu.CompilerParams(vmem_limit_bytes=vmem_limit),
        cost_estimate=cost,
    )(*operands)
    return packed[:, :c_out], packed[:, c_out:]


def build_normalized_adjacency(edge_index, num_nodes):
    """Plain-JAX glue: dense D^-1/2 (A + I) D^-1/2 from an edge list (2, E)."""
    A = jnp.zeros((num_nodes, num_nodes), jnp.float32)
    A = A.at[edge_index[0], edge_index[1]].set(1.0)
    A = A + jnp.eye(num_nodes, dtype=jnp.float32)          # self loops
    deg = A.sum(axis=1)
    d_inv_sqrt = 1.0 / jnp.sqrt(deg)
    return A * d_inv_sqrt[:, None] * d_inv_sqrt[None, :]


def reference_encoder(x, a_hat, p):
    """Plain-JAX f32 reference of the original torch forward (for validation)."""
    def ln(h):
        m = h.mean(-1, keepdims=True)
        v = ((h - m) ** 2).mean(-1, keepdims=True)
        return (h - m) / jnp.sqrt(v + 1e-5)

    h_sig = jnp.maximum(a_hat @ (x @ p['sig_w']) + p['sig_b'], 0.0)
    s = h_sig.sum(0, keepdims=True)
    g1 = jnp.tanh(s @ p['fc1_wt'] + p['fc1_b'])
    b1 = jnp.tanh(s @ p['fc2_wt'] + p['fc2_b'])
    g2 = jnp.tanh(s @ p['fc3_wt'] + p['fc3_b'])
    b2 = jnp.tanh(s @ p['fc4_wt'] + p['fc4_b'])

    def gated(h, w1, w2, b, g, gamma, beta):
        gate = jax.nn.sigmoid(g)
        hh = gate * (h @ w1) + (1.0 - gate) * (h @ w2)
        hh = a_hat @ hh + b
        return gamma * hh + beta

    h1 = ln(jnp.maximum(gated(x, p['c1_w1'], p['c1_w2'], p['c1_b'], p['c1_g'], g1, b1), 0.0))
    mu = ln(gated(h1, p['mu_w1'], p['mu_w2'], p['mu_b'], p['mu_g'], g2, b2))
    lv = ln(gated(h1, p['lv_w1'], p['lv_w2'], p['lv_b'], p['lv_g'], g2, b2))
    return mu, lv


if __name__ == "__main__":
    N, C_IN, C_OUT = 8, 4, 8
    C2 = 2 * C_OUT

    key = jax.random.PRNGKey(0)
    ks = jax.random.split(key, 24)
    w = lambda k, shape, scale=0.3: scale * jax.random.normal(k, shape, jnp.float32)

    # undirected ring graph: edge_index (2, 2N)
    src = jnp.arange(N)
    dst = (src + 1) % N
    edge_index = jnp.stack([jnp.concatenate([src, dst]),
                            jnp.concatenate([dst, src])])
    a_hat = build_normalized_adjacency(edge_index, N)

    x = jax.random.normal(ks[0], (N, C_IN), jnp.float32)

    params = {
        # GraphSignature: MetaGCNConv(C_IN, 2*C_OUT) weight/bias
        'sig_w': w(ks[1], (C_IN, C2)),
        'sig_b': w(ks[2], (1, C2)),
        # nn.Linear weights are (out, in) in torch; pre-transpose to (in, out) for the kernel.
        'fc1_wt': w(ks[3], (C2, C2)).T,      'fc1_b': w(ks[4], (1, C2)),
        'fc2_wt': w(ks[5], (C2, C2)).T,      'fc2_b': w(ks[6], (1, C2)),
        'fc3_wt': w(ks[7], (C_OUT, C2)).T,   'fc3_b': w(ks[8], (1, C_OUT)),
        'fc4_wt': w(ks[9], (C_OUT, C2)).T,   'fc4_b': w(ks[10], (1, C_OUT)),
        # encoder.conv1 : MetaGatedGCNConv(C_IN, 2*C_OUT)
        'c1_w1': w(ks[11], (C_IN, C2)), 'c1_w2': w(ks[12], (C_IN, C2)),
        'c1_b':  w(ks[13], (1, C2)),    'c1_g':  w(ks[14], (1, C2)),
        # encoder.conv_mu : MetaGatedGCNConv(2*C_OUT, C_OUT)
        'mu_w1': w(ks[15], (C2, C_OUT)), 'mu_w2': w(ks[16], (C2, C_OUT)),
        'mu_b':  w(ks[17], (1, C_OUT)),  'mu_g':  w(ks[18], (1, C_OUT)),
        # encoder.conv_logvar : MetaGatedGCNConv(2*C_OUT, C_OUT)
        'lv_w1': w(ks[19], (C2, C_OUT)), 'lv_w2': w(ks[20], (C2, C_OUT)),
        'lv_b':  w(ks[21], (1, C_OUT)),  'lv_g':  w(ks[22], (1, C_OUT)),
    }

    mu, logvar = jax.block_until_ready(meta_gated_signature_encoder(x, a_hat, params))
    assert mu.shape == (N, C_OUT) and logvar.shape == (N, C_OUT)
    assert bool(jnp.all(jnp.isfinite(mu))) and bool(jnp.all(jnp.isfinite(logvar)))

    # Validate against the plain-JAX f32 reference (bf16 matmuls -> loose tolerance).
    mu_ref, lv_ref = reference_encoder(x, a_hat, params)
    assert float(jnp.max(jnp.abs(mu - mu_ref))) < 0.15
    assert float(jnp.max(jnp.abs(logvar - lv_ref))) < 0.15

    print("KERNEL_OK")
</pallas_src>

<mosaic_0001>
module attributes {stable_mosaic.version = 11 : i64} {
  func.func @encoder_kernel(%arg0: memref<8x4xf32, #tpu.memory_space<vmem>>, %arg1: memref<8x8xbf16, #tpu.memory_space<vmem>>, %arg2: memref<4x48xf32, #tpu.memory_space<vmem>>, %arg3: memref<16x80xf32, #tpu.memory_space<vmem>>, %arg4: memref<1x128xf32, #tpu.memory_space<vmem>>, %arg5: memref<8x16xf32, #tpu.memory_space<vmem>>) attributes {dimension_semantics = [], scalar_prefetch = 0 : i64, scratch_operands = 0 : i64, tpu.core_type = #tpu.core_type<tc>} {
    %c0 = arith.constant 0 : index
    %c0_0 = arith.constant 0 : index
    %0 = vector.load %arg1[%c0, %c0_0] : memref<8x8xbf16, #tpu.memory_space<vmem>>, vector<8x8xbf16>
    %c0_1 = arith.constant 0 : index
    %c0_2 = arith.constant 0 : index
    %1 = vector.load %arg0[%c0_1, %c0_2] : memref<8x4xf32, #tpu.memory_space<vmem>>, vector<8x4xf32>
    %2 = arith.truncf %1 : vector<8x4xf32> to vector<8x4xbf16>
    %c0_3 = arith.constant 0 : index
    %c0_4 = arith.constant 0 : index
    %3 = vector.load %arg2[%c0_3, %c0_4] : memref<4x48xf32, #tpu.memory_space<vmem>>, vector<4x16xf32>
    %c0_5 = arith.constant 0 : index
    %c16 = arith.constant 16 : index
    %4 = vector.load %arg2[%c0_5, %c16] : memref<4x48xf32, #tpu.memory_space<vmem>>, vector<4x16xf32>
    %c0_6 = arith.constant 0 : index
    %c32 = arith.constant 32 : index
    %5 = vector.load %arg2[%c0_6, %c32] : memref<4x48xf32, #tpu.memory_space<vmem>>, vector<4x16xf32>
    %c0_7 = arith.constant 0 : index
    %c0_8 = arith.constant 0 : index
    %6 = vector.load %arg3[%c0_7, %c0_8] : memref<16x80xf32, #tpu.memory_space<vmem>>, vector<16x48xf32>
    %c0_9 = arith.constant 0 : index
    %c48 = arith.constant 48 : index
    %7 = vector.load %arg3[%c0_9, %c48] : memref<16x80xf32, #tpu.memory_space<vmem>>, vector<16x8xf32>
    %c0_10 = arith.constant 0 : index
    %c56 = arith.constant 56 : index
    %8 = vector.load %arg3[%c0_10, %c56] : memref<16x80xf32, #tpu.memory_space<vmem>>, vector<16x8xf32>
    %c0_11 = arith.constant 0 : index
    %c64 = arith.constant 64 : index
    %9 = vector.load %arg3[%c0_11, %c64] : memref<16x80xf32, #tpu.memory_space<vmem>>, vector<16x8xf32>
    %c0_12 = arith.constant 0 : index
    %c72 = arith.constant 72 : index
    %10 = vector.load %arg3[%c0_12, %c72] : memref<16x80xf32, #tpu.memory_space<vmem>>, vector<16x8xf32>
    %c0_13 = arith.constant 0 : index
    %c0_14 = arith.constant 0 : index
    %11 = vector.load %arg4[%c0_13, %c0_14] : memref<1x128xf32, #tpu.memory_space<vmem>>, vector<1x128xf32>
    %12 = vector.extract_strided_slice %11 {offsets = [0, 0], sizes = [1, 16], strides = [1, 1]} : vector<1x128xf32> to vector<1x16xf32>
    %13 = vector.extract_strided_slice %11 {offsets = [0, 16], sizes = [1, 48], strides = [1, 1]} : vector<1x128xf32> to vector<1x48xf32>
    %14 = vector.extract_strided_slice %11 {offsets = [0, 64], sizes = [1, 16], strides = [1, 1]} : vector<1x128xf32> to vector<1x16xf32>
    %15 = vector.extract_strided_slice %11 {offsets = [0, 80], sizes = [1, 16], strides = [1, 1]} : vector<1x128xf32> to vector<1x16xf32>
    %16 = vector.extract_strided_slice %11 {offsets = [0, 96], sizes = [1, 8], strides = [1, 1]} : vector<1x128xf32> to vector<1x8xf32>
    %17 = vector.extract_strided_slice %11 {offsets = [0, 104], sizes = [1, 8], strides = [1, 1]} : vector<1x128xf32> to vector<1x8xf32>
    %18 = vector.extract_strided_slice %11 {offsets = [0, 112], sizes = [1, 8], strides = [1, 1]} : vector<1x128xf32> to vector<1x8xf32>
    %19 = vector.extract_strided_slice %11 {offsets = [0, 120], sizes = [1, 8], strides = [1, 1]} : vector<1x128xf32> to vector<1x8xf32>
    %20 = arith.negf %15 : vector<1x16xf32>
    %21 = math.exp %20 : vector<1x16xf32>
    %cst = arith.constant 1.000000e+00 : f32
    %22 = vector.broadcast %cst : f32 to vector<1x16xf32>
    %23 = arith.addf %22, %21 : vector<1x16xf32>
    %24 = arith.divf %22, %23 : vector<1x16xf32>
    %25 = vector.broadcast %24 : vector<1x16xf32> to vector<4x16xf32>
    %26 = arith.mulf %25, %4 : vector<4x16xf32>
    %cst_15 = arith.constant 1.000000e+00 : f32
    %27 = vector.broadcast %cst_15 : f32 to vector<1x16xf32>
    %28 = arith.subf %27, %24 : vector<1x16xf32>
    %29 = vector.broadcast %28 : vector<1x16xf32> to vector<4x16xf32>
    %30 = arith.mulf %29, %5 : vector<4x16xf32>
    %31 = arith.addf %26, %30 : vector<4x16xf32>
    %32 = tpu.concatenate %3, %31 in 1 : vector<4x16xf32>, vector<4x16xf32> -> vector<4x32xf32>
    %33 = arith.truncf %32 : vector<4x32xf32> to vector<4x32xbf16>
    %cst_16 = arith.constant dense<0.000000e+00> : vector<8x32xf32>
    %34 = tpu.matmul %2, %33, %cst_16 {dimension_numbers = #tpu.dot_dimension_numbers<[1], [0], [0], [1], [0, 0, 1, 1], [], []>} : vector<8x4xbf16>, vector<4x32xbf16>, vector<8x32xf32> -> vector<8x32xf32>
    %35 = arith.truncf %34 : vector<8x32xf32> to vector<8x32xbf16>
    %cst_17 = arith.constant dense<0.000000e+00> : vector<8x32xf32>
    %36 = tpu.matmul %0, %35, %cst_17 {dimension_numbers = #tpu.dot_dimension_numbers<[1], [0], [0], [1], [0, 0, 1, 1], [], []>} : vector<8x8xbf16>, vector<8x32xbf16>, vector<8x32xf32> -> vector<8x32xf32>
    %37 = vector.extract_strided_slice %36 {offsets = [0, 0], sizes = [8, 16], strides = [1, 1]} : vector<8x32xf32> to vector<8x16xf32>
    %38 = vector.broadcast %12 : vector<1x16xf32> to vector<8x16xf32>
    %39 = arith.addf %37, %38 : vector<8x16xf32>
    %cst_18 = arith.constant 0.000000e+00 : f32
    %40 = vector.broadcast %cst_18 : f32 to vector<8x16xf32>
    %41 = arith.maximumf %39, %40 : vector<8x16xf32>
    %cst_19 = arith.constant dense<0.000000e+00> : vector<16xf32>
    %42 = vector.multi_reduction <add>, %41, %cst_19 [0] : vector<8x16xf32> to vector<16xf32>
    %43 = vector.shape_cast %42 : vector<16xf32> to vector<1x16xf32>
    %cst_20 = arith.constant dense<0.000000e+00> : vector<1x48xf32>
    %44 = tpu.matmul %43, %6, %cst_20 {dimension_numbers = #tpu.dot_dimension_numbers<[1], [0], [0], [1], [0, 0, 1, 1], [], []>} : vector<1x16xf32>, vector<16x48xf32>, vector<1x48xf32> -> vector<1x48xf32>
    %45 = arith.addf %44, %13 : vector<1x48xf32>
    %46 = math.tanh %45 : vector<1x48xf32>
    %47 = vector.extract_strided_slice %46 {offsets = [0, 0], sizes = [1, 16], strides = [1, 1]} : vector<1x48xf32> to vector<1x16xf32>
    %48 = vector.extract_strided_slice %46 {offsets = [0, 16], sizes = [1, 16], strides = [1, 1]} : vector<1x48xf32> to vector<1x16xf32>
    %49 = vector.extract_strided_slice %46 {offsets = [0, 32], sizes = [1, 8], strides = [1, 1]} : vector<1x48xf32> to vector<1x8xf32>
    %50 = vector.extract_strided_slice %46 {offsets = [0, 40], sizes = [1, 8], strides = [1, 1]} : vector<1x48xf32> to vector<1x8xf32>
    %51 = vector.extract_strided_slice %36 {offsets = [0, 16], sizes = [8, 16], strides = [1, 1]} : vector<8x32xf32> to vector<8x16xf32>
    %52 = vector.broadcast %14 : vector<1x16xf32> to vector<8x16xf32>
    %53 = arith.addf %51, %52 : vector<8x16xf32>
    %54 = vector.broadcast %47 : vector<1x16xf32> to vector<8x16xf32>
    %55 = arith.mulf %54, %53 : vector<8x16xf32>
    %56 = vector.broadcast %48 : vector<1x16xf32> to vector<8x16xf32>
    %57 = arith.addf %55, %56 : vector<8x16xf32>
    %cst_21 = arith.constant 0.000000e+00 : f32
    %58 = vector.broadcast %cst_21 : f32 to vector<8x16xf32>
    %59 = arith.maximumf %57, %58 : vector<8x16xf32>
    %cst_22 = arith.constant dense<0.000000e+00> : vector<8xf32>
    %60 = vector.multi_reduction <add>, %59, %cst_22 [1] : vector<8x16xf32> to vector<8xf32>
    %61 = vector.shape_cast %60 : vector<8xf32> to vector<8x1xf32>
    %cst_23 = arith.constant 1.600000e+01 : f32
    %62 = vector.broadcast %cst_23 : f32 to vector<8x1xf32>
    %63 = arith.divf %61, %62 : vector<8x1xf32>
    %64 = vector.broadcast %63 : vector<8x1xf32> to vector<8x16xf32>
    %65 = arith.subf %59, %64 : vector<8x16xf32>
    %66 = arith.mulf %65, %65 : vector<8x16xf32>
    %cst_24 = arith.constant dense<0.000000e+00> : vector<8xf32>
    %67 = vector.multi_reduction <add>, %66, %cst_24 [1] : vector<8x16xf32> to vector<8xf32>
    %68 = vector.shape_cast %67 : vector<8xf32> to vector<8x1xf32>
    %cst_25 = arith.constant 1.600000e+01 : f32
    %69 = vector.broadcast %cst_25 : f32 to vector<8x1xf32>
    %70 = arith.divf %68, %69 : vector<8x1xf32>
    %cst_26 = arith.constant 9.99999974E-6 : f32
    %71 = vector.broadcast %cst_26 : f32 to vector<8x1xf32>
    %72 = arith.addf %70, %71 : vector<8x1xf32>
    %73 = math.rsqrt %72 : vector<8x1xf32>
    %74 = vector.broadcast %73 : vector<8x1xf32> to vector<8x16xf32>
    %75 = arith.mulf %65, %74 : vector<8x16xf32>
    %76 = arith.negf %17 : vector<1x8xf32>
    %77 = math.exp %76 : vector<1x8xf32>
    %cst_27 = arith.constant 1.000000e+00 : f32
    %78 = vector.broadcast %cst_27 : f32 to vector<1x8xf32>
    %79 = arith.addf %78, %77 : vector<1x8xf32>
    %80 = arith.divf %78, %79 : vector<1x8xf32>
    %81 = arith.negf %19 : vector<1x8xf32>
    %82 = math.exp %81 : vector<1x8xf32>
    %cst_28 = arith.constant 1.000000e+00 : f32
    %83 = vector.broadcast %cst_28 : f32 to vector<1x8xf32>
    %84 = arith.addf %83, %82 : vector<1x8xf32>
    %85 = arith.divf %83, %84 : vector<1x8xf32>
    %86 = vector.broadcast %80 : vector<1x8xf32> to vector<16x8xf32>
    %87 = arith.mulf %86, %7 : vector<16x8xf32>
    %cst_29 = arith.constant 1.000000e+00 : f32
    %88 = vector.broadcast %cst_29 : f32 to vector<1x8xf32>
    %89 = arith.subf %88, %80 : vector<1x8xf32>
    %90 = vector.broadcast %89 : vector<1x8xf32> to vector<16x8xf32>
    %91 = arith.mulf %90, %8 : vector<16x8xf32>
    %92 = arith.addf %87, %91 : vector<16x8xf32>
    %93 = vector.broadcast %85 : vector<1x8xf32> to vector<16x8xf32>
    %94 = arith.mulf %93, %9 : vector<16x8xf32>
    %cst_30 = arith.constant 1.000000e+00 : f32
    %95 = vector.broadcast %cst_30 : f32 to vector<1x8xf32>
    %96 = arith.subf %95, %85 : vector<1x8xf32>
    %97 = vector.broadcast %96 : vector<1x8xf32> to vector<16x8xf32>
    %98 = arith.mulf %97, %10 : vector<16x8xf32>
    %99 = arith.addf %94, %98 : vector<16x8xf32>
    %100 = tpu.concatenate %92, %99 in 1 : vector<16x8xf32>, vector<16x8xf32> -> vector<16x16xf32>
    %101 = arith.truncf %100 : vector<16x16xf32> to vector<16x16xbf16>
    %102 = tpu.concatenate %16, %18 in 1 : vector<1x8xf32>, vector<1x8xf32> -> vector<1x16xf32>
    %103 = tpu.concatenate %49, %49 in 1 : vector<1x8xf32>, vector<1x8xf32> -> vector<1x16xf32>
    %104 = tpu.concatenate %50, %50 in 1 : vector<1x8xf32>, vector<1x8xf32> -> vector<1x16xf32>
    %105 = arith.truncf %75 : vector<8x16xf32> to vector<8x16xbf16>
    %cst_31 = arith.constant dense<0.000000e+00> : vector<8x16xf32>
    %106 = tpu.matmul %105, %101, %cst_31 {dimension_numbers = #tpu.dot_dimension_numbers<[1], [0], [0], [1], [0, 0, 1, 1], [], []>} : vector<8x16xbf16>, vector<16x16xbf16>, vector<8x16xf32> -> vector<8x16xf32>
    %107 = arith.truncf %106 : vector<8x16xf32> to vector<8x16xbf16>
    %cst_32 = arith.constant dense<0.000000e+00> : vector<8x16xf32>
    %108 = tpu.matmul %0, %107, %cst_32 {dimension_numbers = #tpu.dot_dimension_numbers<[1], [0], [0], [1], [0, 0, 1, 1], [], []>} : vector<8x8xbf16>, vector<8x16xbf16>, vector<8x16xf32> -> vector<8x16xf32>
    %109 = vector.broadcast %102 : vector<1x16xf32> to vector<8x16xf32>
    %110 = arith.addf %108, %109 : vector<8x16xf32>
    %111 = vector.broadcast %103 : vector<1x16xf32> to vector<8x16xf32>
    %112 = arith.mulf %111, %110 : vector<8x16xf32>
    %113 = vector.broadcast %104 : vector<1x16xf32> to vector<8x16xf32>
    %114 = arith.addf %112, %113 : vector<8x16xf32>
    %115 = vector.extract_strided_slice %114 {offsets = [0, 0], sizes = [8, 8], strides = [1, 1]} : vector<8x16xf32> to vector<8x8xf32>
    %cst_33 = arith.constant dense<0.000000e+00> : vector<8xf32>
    %116 = vector.multi_reduction <add>, %115, %cst_33 [1] : vector<8x8xf32> to vector<8xf32>
    %117 = vector.shape_cast %116 : vector<8xf32> to vector<8x1xf32>
    %cst_34 = arith.constant 8.000000e+00 : f32
    %118 = vector.broadcast %cst_34 : f32 to vector<8x1xf32>
    %119 = arith.divf %117, %118 : vector<8x1xf32>
    %120 = vector.broadcast %119 : vector<8x1xf32> to vector<8x8xf32>
    %121 = arith.subf %115, %120 : vector<8x8xf32>
    %122 = arith.mulf %121, %121 : vector<8x8xf32>
    %cst_35 = arith.constant dense<0.000000e+00> : vector<8xf32>
    %123 = vector.multi_reduction <add>, %122, %cst_35 [1] : vector<8x8xf32> to vector<8xf32>
    %124 = vector.shape_cast %123 : vector<8xf32> to vector<8x1xf32>
    %cst_36 = arith.constant 8.000000e+00 : f32
    %125 = vector.broadcast %cst_36 : f32 to vector<8x1xf32>
    %126 = arith.divf %124, %125 : vector<8x1xf32>
    %cst_37 = arith.constant 9.99999974E-6 : f32
    %127 = vector.broadcast %cst_37 : f32 to vector<8x1xf32>
    %128 = arith.addf %126, %127 : vector<8x1xf32>
    %129 = math.rsqrt %128 : vector<8x1xf32>
    %130 = vector.broadcast %129 : vector<8x1xf32> to vector<8x8xf32>
    %131 = arith.mulf %121, %130 : vector<8x8xf32>
    %132 = vector.extract_strided_slice %114 {offsets = [0, 8], sizes = [8, 8], strides = [1, 1]} : vector<8x16xf32> to vector<8x8xf32>
    %cst_38 = arith.constant dense<0.000000e+00> : vector<8xf32>
    %133 = vector.multi_reduction <add>, %132, %cst_38 [1] : vector<8x8xf32> to vector<8xf32>
    %134 = vector.shape_cast %133 : vector<8xf32> to vector<8x1xf32>
    %cst_39 = arith.constant 8.000000e+00 : f32
    %135 = vector.broadcast %cst_39 : f32 to vector<8x1xf32>
    %136 = arith.divf %134, %135 : vector<8x1xf32>
    %137 = vector.broadcast %136 : vector<8x1xf32> to vector<8x8xf32>
    %138 = arith.subf %132, %137 : vector<8x8xf32>
    %139 = arith.mulf %138, %138 : vector<8x8xf32>
    %cst_40 = arith.constant dense<0.000000e+00> : vector<8xf32>
    %140 = vector.multi_reduction <add>, %139, %cst_40 [1] : vector<8x8xf32> to vector<8xf32>
    %141 = vector.shape_cast %140 : vector<8xf32> to vector<8x1xf32>
    %cst_41 = arith.constant 8.000000e+00 : f32
    %142 = vector.broadcast %cst_41 : f32 to vector<8x1xf32>
    %143 = arith.divf %141, %142 : vector<8x1xf32>
    %cst_42 = arith.constant 9.99999974E-6 : f32
    %144 = vector.broadcast %cst_42 : f32 to vector<8x1xf32>
    %145 = arith.addf %143, %144 : vector<8x1xf32>
    %146 = math.rsqrt %145 : vector<8x1xf32>
    %147 = vector.broadcast %146 : vector<8x1xf32> to vector<8x8xf32>
    %148 = arith.mulf %138, %147 : vector<8x8xf32>
    %149 = tpu.concatenate %131, %148 in 1 : vector<8x8xf32>, vector<8x8xf32> -> vector<8x16xf32>
    %c0_43 = arith.constant 0 : index
    %c0_44 = arith.constant 0 : index
    %150 = vector.load %arg5[%c0_43, %c0_44] : memref<8x16xf32, #tpu.memory_space<vmem>>, vector<8x16xf32>
    tpu.vector_store %arg5[%c0_43, %c0_44], %149 {strides = array<i32>} : memref<8x16xf32, #tpu.memory_space<vmem>>, vector<8x16xf32>,
    return
  }
}

</mosaic_0001>

<bundles_post_ra>
// kernel: tpu_custom_call.1
= control target key start
LH: loop header
LB: loop body
LE: loop exit
PB: predicated region body
PF: predicated region fallthrough
CT: control target
= control target key end

     0   :  { %10 = vsyncpa [#allocation3], 0  ;;  %s804_s0 = inlined_call_operand.vmem [shape: f32[8,4], index: 0, kind: input, shape index: {}]   ;;  %s805_s1 = inlined_call_operand.vmem [shape: bf16[8,8], index: 1, kind: input, shape index: {}]   ;;  %s806_s2 = inlined_call_operand.hbm [shape: f32[4,48], index: 2, kind: input, shape index: {}]   ;;  %s807_s3 = inlined_call_operand.vmem [shape: f32[16,80], index: 3, kind: input, shape index: {}]   ;;  %s808_s4 = inlined_call_operand.vmem [shape: f32[1,128], index: 4, kind: input, shape index: {}]   ;;  %s809_s5 = inlined_call_operand.hbm [shape: f32[8,16], index: 5, kind: output, shape index: {}]  }
   0x1   :  { %11 = vsyncpa [#allocation4], 0  ;;  %s647_s18 = smov [#allocation2]   ;;  %s599_s22 = scalar_lea.hbm %s806_s2, 64 }
   0x2   :  { %s22_s19 = sshll.u32 %s647_s18, 4  ;;  %p600_p0 = scmp.ne.s32.totalorder %s806_s2, %s599_s22  ;;  %s23_s19 = int_to_ptr.vmem [resolvable:$true] %s22_s19 }
   0x3   :  { %p603_p1 = scmp.lt.u32.totalorder %s599_s22, %s806_s2 }
   0x5   :  { %p605_p2 = pnand %p603_p1, %p600_p0 }
   0x7   :  { %608 = shalt.err (!%p605_p2)
}
   0x8   :  { %s609_s27 = scalar_lea.vmem %s23_s19, 64  ;;  %p614_p4 = scmp.lt.s32.totalorder %s23_s19, %s23_s19 }
   0x9   :  { %p610_p3 = scmp.ne.s32.totalorder %s23_s19, %s609_s27  ;;  %p615_p5 = scmp.lt.s32.totalorder %s609_s27, %s609_s27 }
   0xb   :  { %p616_p6 = por %p615_p5, %p614_p4 }
   0xd   :  { %p617_p7 = pnand %p616_p6, %p610_p3 }
   0xf   :  { %620 = shalt.err (!%p617_p7)
}
  0x10   :  { %25 = dma.hbm_to_vmem [thread:$0]  %s806_s2, 64, %s23_s19, [#allocation3]  }
  0x11   :  { %643 = dma.done.wait [#allocation3], 64  }
  0x12   :  { %644 = vsyncadd [#allocation3], 4294967232  ;;  %v37_v0 = vld [vmem:[#allocation2] sm:$0xf]  ;;  %s648_s30 = smov 64   ;;  %s649_s6 = smov 48   ;;  %v48_v5 = vlaneseq }
  0x13   :  { %54 = vrot.lane.b32.xlu0 %v37_v0, %s648_s30  ;;  %v40_v1 = vld [vmem:[%s808_s4] sm:$0x1]  ;;  %v650_v10 = vmov 0.0   ;;  %vm651_vm0 = vmmov 0   ;;  %vm74_vm1 = vcmask 130048   ;;  %vm81_vm2 = vcmask 1041408  }
  0x14   :  { %v509_v2 = vmul.f32 -1.442695, %v40_v1  ;;  %v49_v6 = vshrl.u32 %v48_v5, 7  ;;  %526 = vmatprep.subr.bf16.mxu0 %v650_v10  ;;  %532 = vmatprep.subr.bf16.mxu1 %v650_v10  ;;  %v35_v20 = vld [vmem:[%s804_s0] sm:$0xff]  ;;  %vm77_vm3 = vcmask 31744   ;;  %s652_s9 = smov 80  }
  0x15   :  { %528 = vmatprep.mubr.msk.bf16.mxu0 %vm651_vm0, %v650_v10  ;;  %534 = vmatprep.mubr.msk.bf16.mxu1 %vm651_vm0, %v650_v10  ;;  %v36_v23 = vpack.c.bf16 %v35_v20, %v35_v20  ;;  %s653_s10 = smov 112   ;;  %vm130_vm4 = vcmask 1043456   ;;  %v742_v31 = vld [vmem:[%s805_s1] sm:$0xf]  ;;  %vm126_vm5 = vcmask 64512   ;;  %v39_v33 = vld [vmem:[%s807_s3 + $0x8] sm:$0xff] }
  0x16   :  { %587 = vpow2.f32 %v509_v2  ;;  %v710_v8 = vsub.s32 0, %v49_v6  ;;  %v38_v32 = vld [vmem:[%s807_s3] sm:$0xff]  ;;  %v654_v35 = vmov 0.0|0.0   ;;  %s655_s1 = smov 56   ;;  %s656_s3 = smov 24  }
  0x17   :  { %65 = vrot.lane.b32.xlu0 %v37_v0, %s649_s6  ;;  %v558_v34 = vpack.c.bf16 %v39_v33, %v38_v32  ;;  %s657_s16 = smov 32   ;;  %s658_s17 = smov 96  }
  0x18   :  { %v733_v24 = vrot.slane %v40_v1, %v710_v8  ;;  %s659_s18 = smov 104   ;;  %s660_s19 = smov 88  }
  0x19   :  { %s661_s20 = smov 16   ;;  %s662_s21 = smov 120  }
  0x1a   :  { %s663_s22 = smov [#allocation5]  }
  0x1b   :  { %266 = vrot.lane.b32.xlu0 %v733_v24, %s652_s9  ;;  %s500_s23 = sshll.u32 %s663_s22, 4  ;;  %s501_s23 = int_to_ptr.vmem [resolvable:$true] %s500_s23 }
  0x1c   :  { %s621_s24 = scalar_lea.vmem %s501_s23, 128  ;;  %p626_p9 = scmp.lt.s32.totalorder %s501_s23, %s501_s23 }
  0x1d   :  { %p622_p8 = scmp.ne.s32.totalorder %s501_s23, %s621_s24  ;;  %p627_p10 = scmp.lt.s32.totalorder %s621_s24, %s621_s24 }
  0x1f   :  { %p628_p11 = por %p627_p10, %p626_p9 }
  0x20   :  { %v588_v3 = vpop.eup %587 }
  0x21   :  { %v44_v4 = vadd.f32 1.0, %v588_v3  ;;  %p629_p12 = pnand %p628_p11, %p622_p8 }
  0x23   :  { %589 = vrcp.f32 %v44_v4 }
  0x2d   :  { %v590_v7 = vpop.eup %589 }
  0x2e   :  { %v58_v9 = vsub.f32 1.0, %v590_v7  ;;  %v715_v12 = vrot.slane %v590_v7, %v710_v8 }
  0x30   :  { %v718_v13 = vrot.slane %v58_v9, %v710_v8 }
  0x85   :  { %v55_v11 = vpop.permute.xlu0 %54 }
  0x86   :  { %v57_v15 = vmul.f32 %v55_v11, %v715_v12 }
  0x89   :  { %v66_v14 = vpop.permute.xlu0 %65 }
  0x8a   :  { %v68_v16 = vmul.f32 %v66_v14, %v718_v13 }
  0x8c   :  { %v69_v17 = vadd.f32 %v68_v16, %v57_v15 }
  0x8d   :  { %v267_v36 = vpop.permute.xlu0 %266 }
  0x8e   :  { %71 = vrot.lane.b32.xlu1 %v69_v17, %s648_s30 }
  0x92   :  { %189 = vrot.lane.b32.xlu1 %v733_v24, %s653_s10 }
 0x100   :  { %v72_v18 = vpop.permute.xlu1 %71 }
 0x101   :  { %v75_v19 = vsel %vm74_vm1, %v37_v0, %v72_v18 }
 0x102   :  { %v76_v21 = vpack.c.bf16 %v75_v19, %v75_v19 }
 0x104   :  { %v83_v22 = vsel %vm81_vm2, %v76_v21, 0  ;;  %v190_v51 = vpop.permute.xlu1 %189 }
 0x105   :  { %527 = vmatpush3.bf16.msra.mxu0 %v83_v22 }
 0x106   :  { %557 = vmatprep.subr.bf16.mxu0 %v654_v35 }
 0x108   :  { %529 = vmatmul.mubr.msk.bf16.vlgmr.msra.gmra.mrb[0].mxu0 %vm77_vm3, %v36_v23 }
 0x109   :  { %542 = vmatprep.mubr.msk.f32.mxu0 %vm651_vm0, %v650_v10  ;;  %559 = vmatpush3.bf16.msra.mxu0 %v558_v34 }
 0x10a   :  { %551 = vmatprep.subr.bf16.mxu0 %v650_v10 }
 0x1db   :  { %v119_v25 = vpop.f32.mrb[0].mxu0 }
 0x1dc   :  { %v125_v26 = vpack.c.bf16 %v119_v25, %v119_v25  ;;  %v530_v27 = vpop.f32.mrb[1].mxu0 }
 0x1dd   :  { %v122_v28 = vpop.f32.mrb[2].mxu0 }
 0x1de   :  { %v531_v29 = vpop.f32.mrb[3].mxu0  ;;  %v132_v30 = vsel %vm130_vm4, %v125_v26, 0 }
 0x1df   :  { %533 = vmatpush3.bf16.msra.mxu1 %v132_v30 }
 0x1e0   :  { %545 = vmatprep.subr.bf16.mxu1 %v650_v10 }
 0x1e2   :  { %535 = vmatmul.mubr.msk.bf16.vlgmr.msra.gmra.mrb[0].mxu1 %vm126_vm5, %v742_v31 }
 0x1e3   :  { %547 = vmatprep.mubr.msk.bf16.mxu1 %vm651_vm0, %v650_v10 }
 0x2b5   :  { %v168_v37 = vpop.f32.mrb[0].mxu1 }
 0x2b6   :  { %v180_v38 = vadd.f32 %v733_v24, %v168_v37  ;;  %v269_v39 = vadd.f32 %v267_v36, %v168_v37  ;;  %v536_v40 = vpop.f32.mrb[1].mxu1 }
 0x2b7   :  { %v171_v41 = vpop.f32.mrb[2].mxu1 }
 0x2b8   :  { %v181_v42 = vmax.f32 %v180_v38, 0.0  ;;  %275 = vrot.lane.b32.xlu1 %v269_v39, %s653_s10  ;;  %v537_v43 = vpop.f32.mrb[3].mxu1 }
 0x2ba   :  { %v182_v44 = vsel %vm74_vm1, %v181_v42, 0.0 }
 0x2bb   :  { %v183_v45 = vrot.slane %v182_v44, 4 }
 0x2bd   :  { %v184_v46 = vadd.f32 %v183_v45, %v182_v44 }
 0x2bf   :  { %v185_v47 = vrot.slane %v184_v46, 2 }
 0x2c1   :  { %v186_v48 = vadd.f32 %v185_v47, %v184_v46 }
 0x2c3   :  { %v187_v49 = vrot.slane %v186_v48, 1 }
 0x2c5   :  { %v188_v50 = vadd.f32 %v187_v49, %v186_v48 }
 0x2c7   :  { %543 = vmatmul.mubr.msk.f32.vlgmr.msra.gmra.mrb[4].mxu0 %vm74_vm1, %v188_v50 }
 0x2c8   :  { %553 = vmatprep.mubr.msk.bf16.mxu0 %vm651_vm0, %v650_v10 }
 0x32a   :  { %v276_v57 = vpop.permute.xlu1 %275 }
 0x39a   :  { %v261_v52 = vpop.f32.mrb[4].mxu0 }
 0x39b   :  { %v262_v53 = vadd.f32 %v261_v52, %v190_v51  ;;  %v544_v54 = vpop.f32.mrb[5].mxu0 }
 0x39d   :  { %591 = vtanh.f32 %v262_v53 }
 0x3a7   :  { %v592_v55 = vpop.eup %591 }
 0x3a8   :  { %v273_v56 = vrot.slane %v592_v55, %v710_v8 }
 0x3aa   :  { %280 = vrot.lane.b32.xlu0 %v273_v56, %s653_s10  ;;  %v278_v58 = vmul.f32 %v276_v57, %v273_v56 }
 0x3ae   :  { %301 = vrot.lane.b32.xlu0 %v38_v32, %s655_s1 }
 0x3b2   :  { %303 = vrot.lane.b32.xlu0 %v39_v33, %s655_s1 }
 0x3b6   :  { %309 = vrot.lane.b32.xlu0 %v38_v32, %s649_s6 }
 0x3ba   :  { %311 = vrot.lane.b32.xlu0 %v39_v33, %s649_s6 }
 0x41c   :  { %v281_v59 = vpop.permute.xlu0 %280 }
 0x41d   :  { %v283_v60 = vadd.f32 %v281_v59, %v278_v58 }
 0x41f   :  { %v284_v61 = vmax.f32 %v283_v60, 0.0 }
 0x420   :  { %v302_v62 = vpop.permute.xlu0 %301 }
 0x421   :  { %v285_v63 = vsel %vm74_vm1, %v284_v61, 0.0  ;;  %v307_v2 = vmul.f32 %v302_v62, %v715_v12 }
 0x422   :  { %286 = vadd.xlane.f32.xlu1 %v285_v63 }
 0x424   :  { %v304_v0 = vpop.permute.xlu0 %303 }
 0x425   :  { %v308_v4 = vmul.f32 %v304_v0, %v715_v12 }
 0x428   :  { %v310_v1 = vpop.permute.xlu0 %309 }
 0x429   :  { %v315_v3 = vmul.f32 %v310_v1, %v718_v13 }
 0x42b   :  { %v317_v6 = vadd.f32 %v315_v3, %v307_v2 }
 0x42c   :  { %v312_v5 = vpop.permute.xlu0 %311 }
 0x42d   :  { %v316_v7 = vmul.f32 %v312_v5, %v718_v13 }
 0x42f   :  { %v318_v9 = vadd.f32 %v316_v7, %v308_v4 }
 0x431   :  { %v577_v10 = vpack.i.bf16 %v318_v9, %v317_v6 }
 0x433   :  { %578 = vrot.lane.b32.xlu1 %v577_v10, %s656_s3 }
 0x437   :  { %336 = vrot.lane.b32.xlu1 %v733_v24, %s657_s16 }
 0x43b   :  { %339 = vrot.lane.b32.xlu1 %v733_v24, %s656_s3 }
 0x43f   :  { %344 = vrot.lane.b32.xlu1 %v592_v55, %s658_s17 }
 0x443   :  { %347 = vrot.lane.b32.xlu1 %v592_v55, %s659_s18 }
 0x447   :  { %351 = vrot.lane.b32.xlu1 %v592_v55, %s660_s19 }
 0x4af   :  { %v287_v11 = vpop.xlane.xlu1 %286 }
 0x4b0   :  { %v289_v12 = vmul.f32 0.0625, %v287_v11 }
 0x4b2   :  { %v290_v14 = vsub.f32 %v284_v61, %v289_v12 }
 0x4b3   :  { %v579_v18 = vpop.permute.xlu1 %578 }
 0x4b4   :  { %v291_v15 = vmul.f32 %v290_v14, %v290_v14  ;;  %v581_v20 = vunpack.i.h.bf16 %v579_v18  ;;  %v580_v22 = vunpack.i.l.bf16 %v579_v18 }
 0x4b6   :  { %v292_v13 = vsel %vm74_vm1, %v291_v15, 0.0 }
 0x4b7   :  { %293 = vadd.xlane.f32.xlu0 %v292_v13  ;;  %v337_v38 = vpop.permute.xlu1 %336 }
 0x4bb   :  { %v340_v39 = vpop.permute.xlu1 %339 }
 0x4bc   :  { %v342_v42 = vsel %vm126_vm5, %v337_v38, %v340_v39 }
 0x4bd   :  { %v403_v45 = vrot.slane %v342_v42, %v710_v8 }
 0x4bf   :  { %v345_v40 = vpop.permute.xlu1 %344 }
 0x4c3   :  { %v348_v41 = vpop.permute.xlu1 %347 }
 0x4c4   :  { %v350_v44 = vsel %vm126_vm5, %v345_v40, %v348_v41 }
 0x4c5   :  { %v450_v48 = vrot.slane %v350_v44, %v710_v8 }
 0x4c7   :  { %v352_v43 = vpop.permute.xlu1 %351 }
 0x4c8   :  { %v354_v46 = vsel %vm126_vm5, %v352_v43, %v345_v40 }
 0x4cd   :  { %583 = vrot.lane.b32.xlu0 %v577_v10, %s661_s20 }
 0x544   :  { %v294_v16 = vpop.xlane.xlu0 %293 }
 0x545   :  { %v295_v17 = vmul.f32 0.0625, %v294_v16 }
 0x547   :  { %v296_v19 = vadd.f32 1e-05, %v295_v17 }
 0x548   :  { %v584_v21 = vpop.permute.xlu0 %583 }
 0x549   :  { %593 = vrsqrt.f32 %v296_v19  ;;  %v586_v23 = vunpack.i.h.bf16 %v584_v21  ;;  %v585_v24 = vunpack.i.l.bf16 %v584_v21 }
 0x54b   :  { %v333_v25 = vsel %vm126_vm5, %v580_v22, %v585_v24  ;;  %v334_v26 = vsel %vm126_vm5, %v581_v20, %v586_v23 }
 0x54c   :  { %v335_v27 = vpack.c.bf16 %v334_v26, %v333_v25 }
 0x54e   :  { %546 = vmatpush3.bf16.msra.mxu1 %v335_v27 }
 0x553   :  { %v594_v28 = vpop.eup %593 }
 0x554   :  { %v298_v29 = vmul.f32 %v594_v28, %v290_v14 }
 0x556   :  { %v355_v30 = vpack.c.bf16 %v298_v29, %v298_v29 }
 0x558   :  { %548 = vmatmul.mubr.msk.bf16.vlgmr.msra.gmra.mrb[4].mxu1 %vm74_vm1, %v355_v30 }
 0x62b   :  { %v393_v32 = vpop.f32.mrb[4].mxu1 }
 0x62c   :  { %v399_v33 = vpack.c.bf16 %v393_v32, %v393_v32  ;;  %v549_v34 = vpop.f32.mrb[5].mxu1 }
 0x62d   :  { %v396_v35 = vpop.f32.mrb[6].mxu1 }
 0x62e   :  { %v405_v36 = vsel %vm130_vm4, %v399_v33, 0  ;;  %v550_v37 = vpop.f32.mrb[7].mxu1 }
 0x62f   :  { %552 = vmatpush3.bf16.msra.mxu0 %v405_v36 }
 0x632   :  { %554 = vmatmul.mubr.msk.bf16.vlgmr.msra.gmra.mrb[8].mxu0 %vm126_vm5, %v742_v31  ;;  %v455_v31 = vrot.slane %v354_v46, %v710_v8 }
 0x705   :  { %v441_v47 = vpop.f32.mrb[8].mxu0 }
 0x706   :  { %v442_v49 = vadd.f32 %v441_v47, %v403_v45  ;;  %v555_v50 = vpop.f32.mrb[9].mxu0 }
 0x707   :  { %v444_v51 = vpop.f32.mrb[10].mxu0 }
 0x708   :  { %v451_v52 = vmul.f32 %v450_v48, %v442_v49  ;;  %v556_v53 = vpop.f32.mrb[11].mxu0 }
 0x70a   :  { %v456_v54 = vadd.f32 %v455_v31, %v451_v52 }
 0x70c   :  { %472 = vrot.lane.b32.xlu0 %v456_v54, %s662_s21  ;;  %v457_v55 = vsel %vm126_vm5, %v456_v54, 0.0 }
 0x72b   :  { %458 = vadd.xlane.f32.xlu0 %v457_v55 }
 0x77e   :  { %v473_v56 = vpop.permute.xlu0 %472 }
 0x77f   :  { %v475_v57 = vsel %vm126_vm5, %v473_v56, 0.0 }
 0x780   :  { %476 = vadd.xlane.f32.xlu1 %v475_v57 }
 0x7b8   :  { %v459_v58 = vpop.xlane.xlu0 %458 }
 0x7b9   :  { %v461_v59 = vmul.f32 0.125, %v459_v58 }
 0x7bb   :  { %v462_v60 = vsub.f32 %v456_v54, %v461_v59 }
 0x7bd   :  { %v463_v61 = vmul.f32 %v462_v60, %v462_v60 }
 0x7bf   :  { %v464_v62 = vsel %vm126_vm5, %v463_v61, 0.0 }
 0x7c0   :  { %465 = vadd.xlane.f32.xlu1 %v464_v62 }
 0x80d   :  { %v477_v8 = vpop.xlane.xlu1 %476 }
 0x80e   :  { %v478_v63 = vmul.f32 0.125, %v477_v8 }
 0x810   :  { %v479_v0 = vsub.f32 %v456_v54, %v478_v63 }
 0x812   :  { %v480_v1 = vmul.f32 %v479_v0, %v479_v0 }
 0x814   :  { %482 = vrot.lane.b32.xlu0 %v480_v1, %s662_s21 }
 0x84d   :  { %v466_v4 = vpop.xlane.xlu1 %465 }
 0x84e   :  { %v467_v5 = vmul.f32 0.125, %v466_v4 }
 0x850   :  { %v468_v6 = vadd.f32 1e-05, %v467_v5 }
 0x852   :  { %595 = vrsqrt.f32 %v468_v6 }
 0x85c   :  { %v596_v11 = vpop.eup %595 }
 0x85d   :  { %v470_v14 = vmul.f32 %v596_v11, %v462_v60 }
 0x886   :  { %v483_v2 = vpop.permute.xlu0 %482 }
 0x887   :  { %v485_v3 = vsel %vm126_vm5, %v483_v2, 0.0 }
 0x888   :  { %486 = vadd.xlane.f32.xlu1 %v485_v3 }
 0x915   :  { %v487_v7 = vpop.xlane.xlu1 %486 }
 0x916   :  { %v488_v9 = vmul.f32 0.125, %v487_v7 }
 0x918   :  { %v489_v10 = vadd.f32 1e-05, %v488_v9 }
 0x91a   :  { %597 = vrsqrt.f32 %v489_v10 }
 0x924   :  { %v598_v12 = vpop.eup %597 }
 0x925   :  { %v491_v15 = vmul.f32 %v598_v12, %v479_v0 }
 0x927   :  { %v492_v13 = vsel %vm126_vm5, %v470_v14, %v491_v15 }
 0x928   :  { %493 = vst.msk [vmem:[#allocation5] sm:$0xff] %vm74_vm1, %v492_v13 }
 0x929   :  { %632 = shalt.err (!%p629_p12)
}
 0x92a   :  { %s633_s27 = scalar_lea.hbm %s809_s5, 128 }
 0x92b   :  { %p634_p13 = scmp.ne.s32.totalorder %s809_s5, %s633_s27  ;;  %p637_p0 = scmp.lt.u32.totalorder %s633_s27, %s809_s5 }
 0x92d   :  { %p639_p1 = pnand %p637_p0, %p634_p13 }
 0x92f   :  { %642 = shalt.err (!%p639_p1)
}
 0x930   :  { %503 = dma.vmem_to_hbm [thread:$0]  %s501_s23, 128, %s809_s5, [#allocation4]  }
 0x931   :  { %645 = dma.done.wait [#allocation4], 128  }
 0x932   :  { %646 = vsyncadd [#allocation4], 4294967168 }
 0x933   :  { %507 = vsyncpa [#allocation3], 1 }
 0x934   :  { %508 = vsyncpa [#allocation4], 1 }

</bundles_post_ra>
